<compile_context>
chip_gen: v7x
topology: tpu7x:2x2x1
jax: 0.10.0
libtpu: 0.0.40
codegen_flags: <defaults>
</compile_context>

<pallas_src>
import functools

import jax
import jax.numpy as jnp
from jax.experimental import pallas as pl

BN_EPS = 1e-5
LANES = 128  # packing width for the BN-parameter block (max feature dim <= 128)


def _simplenet_kernel(x_ref, w1_ref, w2_ref, w3_ref, bn_ref, o_ref, *, dims):
    """Fused 3-layer MLP: relu(BN(h @ W)) applied three times, all in VMEM."""
    _, n1, n2, out_dim = dims

    def layer(h, w_ref, gamma, beta):
        # Linear on the MXU. The linear bias is intentionally omitted: a
        # per-feature constant added before training-mode BatchNorm cancels
        # exactly when the batch mean is subtracted.
        y = jnp.dot(h, w_ref[...], preferred_element_type=jnp.float32)
        # Training-mode BatchNorm1d statistics (biased variance, two-pass form
        # for numerical robustness; `centered` is reused by the epilogue).
        inv_b = 1.0 / y.shape[0]
        mean = jnp.sum(y, axis=0, keepdims=True) * inv_b
        centered = y - mean
        var = jnp.sum(centered * centered, axis=0, keepdims=True) * inv_b
        # Fold gamma into the normalization scale (rsqrt lands on the EUP).
        scale = gamma * jax.lax.rsqrt(var + BN_EPS)
        # ReLU.
        return jnp.maximum(centered * scale + beta, 0.0)

    bn = bn_ref[...]  # (8, 128): rows = g1, b1, g2, b2, g3, b3, 0, 0
    h = layer(x_ref[...], w1_ref, bn[0:1, :n1], bn[1:2, :n1])
    h = layer(h, w2_ref, bn[2:3, :n2], bn[3:4, :n2])
    o_ref[...] = layer(h, w3_ref, bn[4:5, :out_dim], bn[5:6, :out_dim]).astype(
        o_ref.dtype)


def _full_spec(shape):
    # grid=() -> index_map takes no grid indices; whole array is one block.
    return pl.BlockSpec(shape, lambda: (0,) * len(shape))


def simplenet_forward(x, w1, w2, w3, bn_packed, dims):
    """x: (B, in_dim) f32. w*: live-shaped weights. bn_packed: (8, 128) f32."""
    B = x.shape[0]
    out_dim = dims[-1]
    kernel = functools.partial(_simplenet_kernel, dims=dims)
    return pl.pallas_call(
        kernel,
        out_shape=jax.ShapeDtypeStruct((B, out_dim), jnp.float32),
        grid=(),
        in_specs=[
            _full_spec(x.shape),
            _full_spec(w1.shape), _full_spec(w2.shape), _full_spec(w3.shape),
            _full_spec(bn_packed.shape),
        ],
        out_specs=_full_spec((B, out_dim)),
    )(x, w1, w2, w3, bn_packed)


class SimpleNetPallas:
    """JAX/Pallas port of PyTorch `simple_net` (training-mode BatchNorm)."""

    def __init__(self, in_dim, n_hidden_1, n_hidden_2, out_dim, key):
        assert max(n_hidden_1, n_hidden_2, out_dim) <= LANES
        self.dims = (in_dim, n_hidden_1, n_hidden_2, out_dim)
        layer_dims = [(in_dim, n_hidden_1), (n_hidden_1, n_hidden_2),
                      (n_hidden_2, out_dim)]

        weights, biases, gammas, betas = [], [], [], []
        for (din, dout) in layer_dims:
            key, kw, kb, kg, kbt = jax.random.split(key, 5)
            # PyTorch nn.Linear default init: U(-1/sqrt(din), 1/sqrt(din)).
            bound = 1.0 / (din ** 0.5)
            w = jax.random.uniform(kw, (dout, din), jnp.float32, -bound, bound).T
            b = jax.random.uniform(kb, (dout,), jnp.float32, -bound, bound)
            # PyTorch BatchNorm1d default init is gamma=1, beta=0; perturb them
            # here so the learnable-affine path is actually exercised by the
            # self-check (forward semantics are identical for any gamma/beta).
            g = 1.0 + 0.1 * jax.random.normal(kg, (dout,), jnp.float32)
            bt = 0.1 * jax.random.normal(kbt, (dout,), jnp.float32)
            weights.append(w)   # (din, dout), live shape, no padding
            biases.append(b)    # used only by the reference (cancels in kernel)
            gammas.append(g)
            betas.append(bt)

        # Pack the six BN vectors into one (8, 128) tile -> one DMA descriptor.
        bn = jnp.zeros((8, LANES), jnp.float32)
        for i, (g, bt) in enumerate(zip(gammas, betas)):
            bn = bn.at[2 * i, :g.shape[0]].set(g)
            bn = bn.at[2 * i + 1, :bt.shape[0]].set(bt)

        self.weights = tuple(weights)
        self.biases = tuple(biases)
        self.gammas = tuple(gammas)
        self.betas = tuple(betas)
        self.bn_packed = bn

    @functools.partial(jax.jit, static_argnums=0)
    def __call__(self, x):
        w1, w2, w3 = self.weights
        return simplenet_forward(x, w1, w2, w3, self.bn_packed, self.dims)

    def reference(self, x):
        """Pure-JAX unfused reference with explicit Linear bias + BN affine."""
        h = x
        for w, b, g, bt in zip(self.weights, self.biases, self.gammas, self.betas):
            y = h @ w + b
            mean = jnp.mean(y, axis=0, keepdims=True)
            var = jnp.mean((y - mean) ** 2, axis=0, keepdims=True)
            h = jnp.maximum((y - mean) * jax.lax.rsqrt(var + BN_EPS) * g + bt, 0.0)
        return h


if __name__ == "__main__":
    key = jax.random.PRNGKey(0)
    key, kx, kp = jax.random.split(key, 3)

    batch = 8
    in_dim, n_hidden_1, n_hidden_2, out_dim = 32, 64, 32, 16

    net = SimpleNetPallas(in_dim, n_hidden_1, n_hidden_2, out_dim, kp)
    x = jax.random.normal(kx, (batch, in_dim), jnp.float32)

    out = net(x)
    jax.block_until_ready(out)
    assert out.shape == (batch, out_dim), out.shape
    assert out.dtype == jnp.float32

    ref = net.reference(x)
    assert jnp.allclose(out, ref, rtol=1e-4, atol=1e-4), float(
        jnp.max(jnp.abs(out - ref)))

    print("KERNEL_OK")
</pallas_src>

<mosaic_0001>
module attributes {stable_mosaic.version = 11 : i64} {
  func.func @_simplenet_kernel(%arg0: memref<8x32xf32, #tpu.memory_space<vmem>>, %arg1: memref<32x64xf32, #tpu.memory_space<vmem>>, %arg2: memref<64x32xf32, #tpu.memory_space<vmem>>, %arg3: memref<32x16xf32, #tpu.memory_space<vmem>>, %arg4: memref<8x128xf32, #tpu.memory_space<vmem>>, %arg5: memref<8x16xf32, #tpu.memory_space<vmem>>) attributes {dimension_semantics = [], scalar_prefetch = 0 : i64, scratch_operands = 0 : i64, tpu.core_type = #tpu.core_type<tc>} {
    %c0 = arith.constant 0 : index
    %c0_0 = arith.constant 0 : index
    %0 = vector.load %arg4[%c0, %c0_0] : memref<8x128xf32, #tpu.memory_space<vmem>>, vector<8x128xf32>
    %c0_1 = arith.constant 0 : index
    %c0_2 = arith.constant 0 : index
    %1 = vector.load %arg0[%c0_1, %c0_2] : memref<8x32xf32, #tpu.memory_space<vmem>>, vector<8x32xf32>
    %2 = vector.extract_strided_slice %0 {offsets = [0, 0], sizes = [1, 64], strides = [1, 1]} : vector<8x128xf32> to vector<1x64xf32>
    %3 = vector.extract_strided_slice %0 {offsets = [1, 0], sizes = [1, 64], strides = [1, 1]} : vector<8x128xf32> to vector<1x64xf32>
    %c0_3 = arith.constant 0 : index
    %c0_4 = arith.constant 0 : index
    %4 = vector.load %arg1[%c0_3, %c0_4] : memref<32x64xf32, #tpu.memory_space<vmem>>, vector<32x64xf32>
    %cst = arith.constant dense<0.000000e+00> : vector<8x64xf32>
    %5 = tpu.matmul %1, %4, %cst {dimension_numbers = #tpu.dot_dimension_numbers<[1], [0], [0], [1], [0, 0, 1, 1], [], []>} : vector<8x32xf32>, vector<32x64xf32>, vector<8x64xf32> -> vector<8x64xf32>
    %cst_5 = arith.constant dense<0.000000e+00> : vector<64xf32>
    %6 = vector.multi_reduction <add>, %5, %cst_5 [0] : vector<8x64xf32> to vector<64xf32>
    %7 = vector.shape_cast %6 : vector<64xf32> to vector<1x64xf32>
    %cst_6 = arith.constant 1.250000e-01 : f32
    %8 = vector.broadcast %cst_6 : f32 to vector<1x64xf32>
    %9 = arith.mulf %7, %8 : vector<1x64xf32>
    %10 = vector.broadcast %9 : vector<1x64xf32> to vector<8x64xf32>
    %11 = arith.subf %5, %10 : vector<8x64xf32>
    %12 = arith.mulf %11, %11 : vector<8x64xf32>
    %cst_7 = arith.constant dense<0.000000e+00> : vector<64xf32>
    %13 = vector.multi_reduction <add>, %12, %cst_7 [0] : vector<8x64xf32> to vector<64xf32>
    %14 = vector.shape_cast %13 : vector<64xf32> to vector<1x64xf32>
    %cst_8 = arith.constant 1.250000e-01 : f32
    %15 = vector.broadcast %cst_8 : f32 to vector<1x64xf32>
    %16 = arith.mulf %14, %15 : vector<1x64xf32>
    %cst_9 = arith.constant 9.99999974E-6 : f32
    %17 = vector.broadcast %cst_9 : f32 to vector<1x64xf32>
    %18 = arith.addf %16, %17 : vector<1x64xf32>
    %19 = math.rsqrt %18 : vector<1x64xf32>
    %20 = arith.mulf %2, %19 : vector<1x64xf32>
    %21 = vector.broadcast %20 : vector<1x64xf32> to vector<8x64xf32>
    %22 = arith.mulf %11, %21 : vector<8x64xf32>
    %23 = vector.broadcast %3 : vector<1x64xf32> to vector<8x64xf32>
    %24 = arith.addf %22, %23 : vector<8x64xf32>
    %cst_10 = arith.constant 0.000000e+00 : f32
    %25 = vector.broadcast %cst_10 : f32 to vector<8x64xf32>
    %26 = arith.maximumf %24, %25 : vector<8x64xf32>
    %27 = vector.extract_strided_slice %0 {offsets = [2, 0], sizes = [1, 32], strides = [1, 1]} : vector<8x128xf32> to vector<1x32xf32>
    %28 = vector.extract_strided_slice %0 {offsets = [3, 0], sizes = [1, 32], strides = [1, 1]} : vector<8x128xf32> to vector<1x32xf32>
    %c0_11 = arith.constant 0 : index
    %c0_12 = arith.constant 0 : index
    %29 = vector.load %arg2[%c0_11, %c0_12] : memref<64x32xf32, #tpu.memory_space<vmem>>, vector<64x32xf32>
    %cst_13 = arith.constant dense<0.000000e+00> : vector<8x32xf32>
    %30 = tpu.matmul %26, %29, %cst_13 {dimension_numbers = #tpu.dot_dimension_numbers<[1], [0], [0], [1], [0, 0, 1, 1], [], []>} : vector<8x64xf32>, vector<64x32xf32>, vector<8x32xf32> -> vector<8x32xf32>
    %cst_14 = arith.constant dense<0.000000e+00> : vector<32xf32>
    %31 = vector.multi_reduction <add>, %30, %cst_14 [0] : vector<8x32xf32> to vector<32xf32>
    %32 = vector.shape_cast %31 : vector<32xf32> to vector<1x32xf32>
    %cst_15 = arith.constant 1.250000e-01 : f32
    %33 = vector.broadcast %cst_15 : f32 to vector<1x32xf32>
    %34 = arith.mulf %32, %33 : vector<1x32xf32>
    %35 = vector.broadcast %34 : vector<1x32xf32> to vector<8x32xf32>
    %36 = arith.subf %30, %35 : vector<8x32xf32>
    %37 = arith.mulf %36, %36 : vector<8x32xf32>
    %cst_16 = arith.constant dense<0.000000e+00> : vector<32xf32>
    %38 = vector.multi_reduction <add>, %37, %cst_16 [0] : vector<8x32xf32> to vector<32xf32>
    %39 = vector.shape_cast %38 : vector<32xf32> to vector<1x32xf32>
    %cst_17 = arith.constant 1.250000e-01 : f32
    %40 = vector.broadcast %cst_17 : f32 to vector<1x32xf32>
    %41 = arith.mulf %39, %40 : vector<1x32xf32>
    %cst_18 = arith.constant 9.99999974E-6 : f32
    %42 = vector.broadcast %cst_18 : f32 to vector<1x32xf32>
    %43 = arith.addf %41, %42 : vector<1x32xf32>
    %44 = math.rsqrt %43 : vector<1x32xf32>
    %45 = arith.mulf %27, %44 : vector<1x32xf32>
    %46 = vector.broadcast %45 : vector<1x32xf32> to vector<8x32xf32>
    %47 = arith.mulf %36, %46 : vector<8x32xf32>
    %48 = vector.broadcast %28 : vector<1x32xf32> to vector<8x32xf32>
    %49 = arith.addf %47, %48 : vector<8x32xf32>
    %cst_19 = arith.constant 0.000000e+00 : f32
    %50 = vector.broadcast %cst_19 : f32 to vector<8x32xf32>
    %51 = arith.maximumf %49, %50 : vector<8x32xf32>
    %52 = vector.extract_strided_slice %0 {offsets = [4, 0], sizes = [1, 16], strides = [1, 1]} : vector<8x128xf32> to vector<1x16xf32>
    %53 = vector.extract_strided_slice %0 {offsets = [5, 0], sizes = [1, 16], strides = [1, 1]} : vector<8x128xf32> to vector<1x16xf32>
    %c0_20 = arith.constant 0 : index
    %c0_21 = arith.constant 0 : index
    %54 = vector.load %arg3[%c0_20, %c0_21] : memref<32x16xf32, #tpu.memory_space<vmem>>, vector<32x16xf32>
    %cst_22 = arith.constant dense<0.000000e+00> : vector<8x16xf32>
    %55 = tpu.matmul %51, %54, %cst_22 {dimension_numbers = #tpu.dot_dimension_numbers<[1], [0], [0], [1], [0, 0, 1, 1], [], []>} : vector<8x32xf32>, vector<32x16xf32>, vector<8x16xf32> -> vector<8x16xf32>
    %cst_23 = arith.constant dense<0.000000e+00> : vector<16xf32>
    %56 = vector.multi_reduction <add>, %55, %cst_23 [0] : vector<8x16xf32> to vector<16xf32>
    %57 = vector.shape_cast %56 : vector<16xf32> to vector<1x16xf32>
    %cst_24 = arith.constant 1.250000e-01 : f32
    %58 = vector.broadcast %cst_24 : f32 to vector<1x16xf32>
    %59 = arith.mulf %57, %58 : vector<1x16xf32>
    %60 = vector.broadcast %59 : vector<1x16xf32> to vector<8x16xf32>
    %61 = arith.subf %55, %60 : vector<8x16xf32>
    %62 = arith.mulf %61, %61 : vector<8x16xf32>
    %cst_25 = arith.constant dense<0.000000e+00> : vector<16xf32>
    %63 = vector.multi_reduction <add>, %62, %cst_25 [0] : vector<8x16xf32> to vector<16xf32>
    %64 = vector.shape_cast %63 : vector<16xf32> to vector<1x16xf32>
    %cst_26 = arith.constant 1.250000e-01 : f32
    %65 = vector.broadcast %cst_26 : f32 to vector<1x16xf32>
    %66 = arith.mulf %64, %65 : vector<1x16xf32>
    %cst_27 = arith.constant 9.99999974E-6 : f32
    %67 = vector.broadcast %cst_27 : f32 to vector<1x16xf32>
    %68 = arith.addf %66, %67 : vector<1x16xf32>
    %69 = math.rsqrt %68 : vector<1x16xf32>
    %70 = arith.mulf %52, %69 : vector<1x16xf32>
    %71 = vector.broadcast %70 : vector<1x16xf32> to vector<8x16xf32>
    %72 = arith.mulf %61, %71 : vector<8x16xf32>
    %73 = vector.broadcast %53 : vector<1x16xf32> to vector<8x16xf32>
    %74 = arith.addf %72, %73 : vector<8x16xf32>
    %cst_28 = arith.constant 0.000000e+00 : f32
    %75 = vector.broadcast %cst_28 : f32 to vector<8x16xf32>
    %76 = arith.maximumf %74, %75 : vector<8x16xf32>
    %c0_29 = arith.constant 0 : index
    %c0_30 = arith.constant 0 : index
    %77 = vector.load %arg5[%c0_29, %c0_30] : memref<8x16xf32, #tpu.memory_space<vmem>>, vector<8x16xf32>
    tpu.vector_store %arg5[%c0_29, %c0_30], %76 {strides = array<i32>} : memref<8x16xf32, #tpu.memory_space<vmem>>, vector<8x16xf32>,
    return
  }
}

</mosaic_0001>

<bundles_post_ra>
// kernel: a_call__.1
= control target key start
LH: loop header
LB: loop body
LE: loop exit
PB: predicated region body
PF: predicated region fallthrough
CT: control target
= control target key end

     0   :  { %10 = vsyncpa [#allocation3], 0  ;;  %s798_s0 = inlined_call_operand.hbm [shape: f32[8,32], index: 0, kind: input, shape index: {}]   ;;  %s799_s1 = inlined_call_operand.hbm [shape: f32[32,64], index: 1, kind: input, shape index: {}]   ;;  %s800_s2 = inlined_call_operand.hbm [shape: f32[64,32], index: 2, kind: input, shape index: {}]   ;;  %s801_s3 = inlined_call_operand.hbm [shape: f32[32,16], index: 3, kind: input, shape index: {}]   ;;  %s802_s4 = inlined_call_operand.vmem [shape: f32[8,128], index: 4, kind: input, shape index: {}]   ;;  %s803_s5 = inlined_call_operand.hbm [shape: f32[8,16], index: 5, kind: output, shape index: {}]  }
   0x1   :  { %11 = vsyncpa [#allocation6], 0 }
   0x2   :  { %12 = vsyncpa [#allocation9], 0 }
   0x3   :  { %13 = vsyncpa [#allocation4], 0  ;;  %s649_s18 = smov [#allocation5]   ;;  %s531_s22 = scalar_lea.hbm %s799_s1, 512 }
   0x4   :  { %s29_s19 = sshll.u32 %s649_s18, 4  ;;  %p532_p0 = scmp.ne.s32.totalorder %s799_s1, %s531_s22  ;;  %s30_s19 = int_to_ptr.vmem [resolvable:$true] %s29_s19 }
   0x5   :  { %p535_p1 = scmp.lt.u32.totalorder %s531_s22, %s799_s1 }
   0x7   :  { %p537_p2 = pnand %p535_p1, %p532_p0 }
   0x9   :  { %540 = shalt.err (!%p537_p2)
}
   0xa   :  { %s541_s27 = scalar_lea.vmem %s30_s19, 512  ;;  %p546_p4 = scmp.lt.s32.totalorder %s30_s19, %s30_s19 }
   0xb   :  { %p542_p3 = scmp.ne.s32.totalorder %s30_s19, %s541_s27  ;;  %p547_p5 = scmp.lt.s32.totalorder %s541_s27, %s541_s27 }
   0xd   :  { %p548_p6 = por %p547_p5, %p546_p4 }
   0xf   :  { %p549_p7 = pnand %p548_p6, %p542_p3 }
  0x11   :  { %552 = shalt.err (!%p549_p7)
}
  0x12   :  { %s650_s28 = smov 128   ;;  %s651_s29 = smov 8  }
  0x13   :  { %35 = dma.hbm_to_vmem [thread:$0]  %s799_s1, 512, %s30_s19, [#allocation6], %s650_s28, %s650_s28, %s651_s29  }
  0x14   :  { %s652_s7 = smov [#allocation2]   ;;  %s653_s9 = smov [#allocation7]  }
  0x15   :  { %s20_s8 = sshll.u32 %s652_s7, 4  ;;  %s41_s10 = sshll.u32 %s653_s9, 4  ;;  %s21_s8 = int_to_ptr.vmem [resolvable:$true] %s20_s8  ;;  %s42_s10 = int_to_ptr.vmem [resolvable:$true] %s41_s10 }
  0x16   :  { %s553_s13 = scalar_lea.hbm %s798_s0, 128 }
  0x17   :  { %p554_p8 = scmp.ne.s32.totalorder %s798_s0, %s553_s13  ;;  %p557_p9 = scmp.lt.u32.totalorder %s553_s13, %s798_s0 }
  0x19   :  { %p559_p10 = pnand %p557_p9, %p554_p8 }
  0x1b   :  { %562 = shalt.err (!%p559_p10)
}
  0x1c   :  { %s563_s1 = scalar_lea.vmem %s21_s8, 128  ;;  %p568_p12 = scmp.lt.s32.totalorder %s21_s8, %s21_s8 }
  0x1d   :  { %p564_p11 = scmp.ne.s32.totalorder %s21_s8, %s563_s1  ;;  %p569_p13 = scmp.lt.s32.totalorder %s563_s1, %s563_s1 }
  0x1f   :  { %p570_p0 = por %p569_p13, %p568_p12 }
  0x21   :  { %p571_p1 = pnand %p570_p0, %p564_p11 }
  0x23   :  { %574 = shalt.err (!%p571_p1)
}
  0x24   :  { %23 = dma.hbm_to_vmem [thread:$0]  %s798_s0, 128, %s21_s8, [#allocation3]  }
  0x25   :  { %s575_s22 = scalar_lea.hbm %s800_s2, 1024 }
  0x26   :  { %p576_p2 = scmp.ne.s32.totalorder %s800_s2, %s575_s22  ;;  %p579_p3 = scmp.lt.u32.totalorder %s575_s22, %s800_s2 }
  0x28   :  { %p581_p4 = pnand %p579_p3, %p576_p2 }
  0x2a   :  { %584 = shalt.err (!%p581_p4)
}
  0x2b   :  { %s585_s27 = scalar_lea.vmem %s42_s10, 1024  ;;  %p590_p6 = scmp.lt.s32.totalorder %s42_s10, %s42_s10 }
  0x2c   :  { %p586_p5 = scmp.ne.s32.totalorder %s42_s10, %s585_s27  ;;  %p591_p7 = scmp.lt.s32.totalorder %s585_s27, %s585_s27 }
  0x2e   :  { %p592_p8 = por %p591_p7, %p590_p6 }
  0x30   :  { %p593_p9 = pnand %p592_p8, %p586_p5 }
  0x32   :  { %596 = shalt.err (!%p593_p9)
}
  0x33   :  { %47 = dma.hbm_to_vmem [thread:$0]  %s800_s2, 1024, %s42_s10, [#allocation6], %s650_s28, %s650_s28, %s651_s29  }
  0x34   :  { %s654_s6 = smov [#allocation8]   ;;  %s597_s11 = scalar_lea.hbm %s801_s3, 512 }
  0x35   :  { %s53_s7 = sshll.u32 %s654_s6, 4  ;;  %p598_p10 = scmp.ne.s32.totalorder %s801_s3, %s597_s11  ;;  %s54_s7 = int_to_ptr.vmem [resolvable:$true] %s53_s7 }
  0x36   :  { %p601_p11 = scmp.lt.u32.totalorder %s597_s11, %s801_s3 }
  0x38   :  { %p603_p12 = pnand %p601_p11, %p598_p10 }
  0x3a   :  { %606 = shalt.err (!%p603_p12)
}
  0x3b   :  { %s607_s16 = scalar_lea.vmem %s54_s7, 512  ;;  %p612_p0 = scmp.lt.s32.totalorder %s54_s7, %s54_s7 }
  0x3c   :  { %p608_p13 = scmp.ne.s32.totalorder %s54_s7, %s607_s16  ;;  %p613_p1 = scmp.lt.s32.totalorder %s607_s16, %s607_s16 }
  0x3e   :  { %p614_p2 = por %p613_p1, %p612_p0 }
  0x40   :  { %p615_p3 = pnand %p614_p2, %p608_p13 }
  0x42   :  { %618 = shalt.err (!%p615_p3)
}
  0x43   :  { %59 = dma.hbm_to_vmem [thread:$0]  %s801_s3, 512, %s54_s7, [#allocation9], %s650_s28, %s650_s28, %s651_s29  }
  0x44   :  { %641 = dma.done.wait [#allocation3], 128  }
  0x45   :  { %642 = vsyncadd [#allocation3], 4294967168 }
  0x46   :  { %643 = dma.done.wait [#allocation6], 1536  }
  0x47   :  { %644 = vsyncadd [#allocation6], 4294965760 }
  0x48   :  { %645 = dma.done.wait [#allocation9], 512  }
  0x49   :  { %646 = vsyncadd [#allocation9], 4294966784  ;;  %v655_v0 = vmov 0.0|0.0   ;;  %vm656_vm0 = vmmov 0   ;;  %v657_v1 = vmov 0.0   ;;  %v76_v2 = vld [vmem:[#allocation5] sm:$0xff]  ;;  %v176_v42 = vlaneseq }
  0x4a   :  { %491 = vmatprep.subr.bf16.mxu0 %v655_v0  ;;  %458 = vmatprep.mubr.msk.f32.mxu0 %vm656_vm0, %v657_v1  ;;  %v77_v3 = vld [vmem:[#allocation5 + $0x8] sm:$0xff]  ;;  %v78_v4 = vld [vmem:[#allocation5 + $0x10] sm:$0xff]  ;;  %v79_v6 = vld [vmem:[#allocation5 + $0x18] sm:$0xff]  ;;  %vm80_vm1 = vcmask 261120   ;;  %vm154_vm2 = vcmask 523264   ;;  %vm377_vm3 = vcmask 130048  }
  0x4b   :  { %497 = vmatprep.subr.bf16.mxu1 %v655_v0  ;;  %477 = vmatprep.mubr.msk.f32.mxu1 %vm656_vm0, %v657_v1  ;;  %v492_v5 = vpack.c.bf16 %v77_v3, %v76_v2  ;;  %v495_v7 = vpack.c.bf16 %v79_v6, %v78_v4  ;;  %v75_v8 = vld [vmem:[#allocation2] sm:$0xff]  ;;  %v187_v9 = vld [vmem:[#allocation7] sm:$0xff]  ;;  %v188_v10 = vld [vmem:[#allocation7 + $0x8] sm:$0xff]  ;;  %v759_v43 = vshrl.u32 %v176_v42, 7 }
  0x4c   :  { %v498_v11 = vpack.c.bf16 %v188_v10, %v187_v9  ;;  %v189_v12 = vld [vmem:[#allocation7 + $0x10] sm:$0xff]  ;;  %v190_v13 = vld [vmem:[#allocation7 + $0x18] sm:$0xff]  ;;  %v191_v15 = vld [vmem:[#allocation7 + $0x20] sm:$0xff] }
  0x4d   :  { %493 = vmatpush3.bf16.msra.mxu0 %v492_v5  ;;  %v501_v14 = vpack.c.bf16 %v190_v13, %v189_v12  ;;  %v192_v16 = vld [vmem:[#allocation7 + $0x28] sm:$0xff]  ;;  %v193_v18 = vld [vmem:[#allocation7 + $0x30] sm:$0xff]  ;;  %v194_v19 = vld [vmem:[#allocation7 + $0x38] sm:$0xff]  ;;  %v178_v45 = vsub.s32 0, %v759_v43  ;;  %v183_v46 = vsub.s32 1, %v759_v43 }
  0x4e   :  { %494 = vmatprep.subr.bf16.mxu0 %v655_v0  ;;  %499 = vmatpush3.bf16.msra.mxu1 %v498_v11  ;;  %v504_v17 = vpack.c.bf16 %v192_v16, %v191_v15  ;;  %v507_v20 = vpack.c.bf16 %v194_v19, %v193_v18  ;;  %v764_v44 = vld [vmem:[%s802_s4] sm:$0xff]  ;;  %v300_v54 = vld [vmem:[#allocation8] sm:$0xff]  ;;  %v301_v55 = vld [vmem:[#allocation8 + $0x8] sm:$0xff]  ;;  %v296_v18 = vsub.s32 3, %v759_v43  ;;  %s658_s4 = smov [#allocation10]  }
  0x4f   :  { %500 = vmatprep.subr.bf16.mxu1 %v655_v0  ;;  %v184_v50 = vrot.slane %v764_v44, %v183_v46  ;;  %v510_v56 = vpack.c.bf16 %v301_v55, %v300_v54  ;;  %v302_v57 = vld [vmem:[#allocation8 + $0x10] sm:$0xff]  ;;  %v303_v58 = vld [vmem:[#allocation8 + $0x18] sm:$0xff]  ;;  %s417_s29 = sshll.u32 %s658_s4, 4  ;;  %s418_s29 = int_to_ptr.vmem [resolvable:$true] %s417_s29 }
  0x50   :  { %v513_v59 = vpack.c.bf16 %v303_v58, %v302_v57  ;;  %s619_s17 = scalar_lea.vmem %s418_s29, 128  ;;  %p624_p5 = scmp.lt.s32.totalorder %s418_s29, %s418_s29 }
  0x51   :  { %496 = vmatpush3.bf16.msra.mxu0 %v495_v7  ;;  %p620_p4 = scmp.ne.s32.totalorder %s418_s29, %s619_s17  ;;  %p625_p6 = scmp.lt.s32.totalorder %s619_s17, %s619_s17 }
  0x52   :  { %509 = vmatprep.subr.bf16.mxu0 %v655_v0  ;;  %502 = vmatpush3.bf16.msra.mxu1 %v501_v14 }
  0x53   :  { %503 = vmatprep.subr.bf16.mxu1 %v655_v0  ;;  %p626_p7 = por %p625_p6, %p624_p5 }
  0x54   :  { %459 = vmatmul.mubr.msk.f32.vlgmr.msra.gmra.mrb[0].mxu0 %vm80_vm1, %v75_v8 }
  0x55   :  { %488 = vmatprep.mubr.msk.f32.mxu0 %vm656_vm0, %v657_v1  ;;  %511 = vmatpush3.bf16.msra.mxu0 %v510_v56  ;;  %p627_p8 = pnand %p626_p7, %p620_p4 }
  0x56   :  { %505 = vmatpush3.bf16.msra.mxu1 %v504_v17  ;;  %512 = vmatprep.subr.bf16.mxu0 %v655_v0  ;;  %v291_v17 = vsub.s32 2, %v759_v43 }
  0x57   :  { %506 = vmatprep.subr.bf16.mxu1 %v655_v0 }
  0x59   :  { %514 = vmatpush3.bf16.msra.mxu0 %v513_v59 }
  0x5a   :  { %508 = vmatpush3.bf16.msra.mxu1 %v507_v20 }
 0x127   :  { %v150_v21 = vpop.f32.mrb[0].mxu0 }
 0x128   :  { %v155_v22 = vsel %vm154_vm2, %v150_v21, 0.0  ;;  %v460_v23 = vpop.f32.mrb[1].mxu0 }
 0x129   :  { %v156_v24 = vrot.slane %v155_v22, 4 }
 0x12b   :  { %v157_v25 = vadd.f32 %v156_v24, %v155_v22  ;;  %v297_v22 = vrot.slane %v764_v44, %v296_v18 }
 0x12d   :  { %v158_v26 = vrot.slane %v157_v25, 2 }
 0x12f   :  { %v159_v27 = vadd.f32 %v158_v26, %v157_v25 }
 0x131   :  { %v160_v28 = vrot.slane %v159_v27, 1 }
 0x133   :  { %v161_v29 = vadd.f32 %v160_v28, %v159_v27 }
 0x135   :  { %v162_v30 = vmul.f32 0.125, %v161_v29 }
 0x137   :  { %v163_v31 = vsub.f32 %v150_v21, %v162_v30 }
 0x139   :  { %v164_v32 = vmul.f32 %v163_v31, %v163_v31 }
 0x13b   :  { %v165_v33 = vsel %vm154_vm2, %v164_v32, 0.0 }
 0x13c   :  { %v166_v34 = vrot.slane %v165_v33, 4 }
 0x13e   :  { %v167_v35 = vadd.f32 %v166_v34, %v165_v33 }
 0x140   :  { %v168_v36 = vrot.slane %v167_v35, 2 }
 0x142   :  { %v169_v37 = vadd.f32 %v168_v36, %v167_v35 }
 0x144   :  { %v170_v38 = vrot.slane %v169_v37, 1 }
 0x146   :  { %v171_v39 = vadd.f32 %v170_v38, %v169_v37 }
 0x148   :  { %v172_v40 = vmul.f32 0.125, %v171_v39 }
 0x14a   :  { %v173_v41 = vadd.f32 1e-05, %v172_v40 }
 0x14c   :  { %525 = vrsqrt.f32 %v173_v41 }
 0x156   :  { %v526_v47 = vpop.eup %525 }
 0x157   :  { %v175_v48 = vmul.f32 %v526_v47, %v764_v44 }
 0x159   :  { %v179_v49 = vrot.slane %v175_v48, %v178_v45 }
 0x15b   :  { %v180_v51 = vmul.f32 %v179_v49, %v163_v31  ;;  %v401_v49 = vsub.s32 4, %v759_v43 }
 0x15d   :  { %v185_v52 = vadd.f32 %v184_v50, %v180_v51  ;;  %v406_v50 = vsub.s32 5, %v759_v43 }
 0x15f   :  { %v186_v53 = vmax.f32 %v185_v52, 0.0  ;;  %v407_v54 = vrot.slane %v764_v44, %v406_v50 }
 0x161   :  { %478 = vmatmul.mubr.msk.f32.vlgmr.msra.gmra.mrb[0].mxu1 %vm154_vm2, %v186_v53 }
 0x234   :  { %v264_v60 = vpop.f32.mrb[0].mxu1 }
 0x235   :  { %v268_v61 = vsel %vm80_vm1, %v264_v60, 0.0  ;;  %v479_v62 = vpop.f32.mrb[1].mxu1 }
 0x236   :  { %v269_v63 = vrot.slane %v268_v61, 4 }
 0x238   :  { %v270_v1 = vadd.f32 %v269_v63, %v268_v61 }
 0x23a   :  { %v271_v2 = vrot.slane %v270_v1, 2 }
 0x23c   :  { %v272_v3 = vadd.f32 %v271_v2, %v270_v1 }
 0x23e   :  { %v273_v4 = vrot.slane %v272_v3, 1 }
 0x240   :  { %v274_v5 = vadd.f32 %v273_v4, %v272_v3 }
 0x242   :  { %v275_v6 = vmul.f32 0.125, %v274_v5 }
 0x244   :  { %v276_v7 = vsub.f32 %v264_v60, %v275_v6 }
 0x246   :  { %v277_v8 = vmul.f32 %v276_v7, %v276_v7 }
 0x248   :  { %v278_v9 = vsel %vm80_vm1, %v277_v8, 0.0 }
 0x249   :  { %v279_v0 = vrot.slane %v278_v9, 4 }
 0x24b   :  { %v280_v10 = vadd.f32 %v279_v0, %v278_v9 }
 0x24d   :  { %v281_v11 = vrot.slane %v280_v10, 2 }
 0x24f   :  { %v282_v12 = vadd.f32 %v281_v11, %v280_v10 }
 0x251   :  { %v283_v13 = vrot.slane %v282_v12, 1 }
 0x253   :  { %v284_v14 = vadd.f32 %v283_v13, %v282_v12 }
 0x255   :  { %v285_v15 = vmul.f32 0.125, %v284_v14 }
 0x257   :  { %v286_v16 = vadd.f32 1e-05, %v285_v15 }
 0x259   :  { %527 = vrsqrt.f32 %v286_v16 }
 0x263   :  { %v528_v19 = vpop.eup %527 }
 0x264   :  { %v288_v20 = vmul.f32 %v528_v19, %v764_v44 }
 0x266   :  { %v292_v21 = vrot.slane %v288_v20, %v291_v17 }
 0x268   :  { %v293_v23 = vmul.f32 %v292_v21, %v276_v7 }
 0x26a   :  { %v298_v24 = vadd.f32 %v297_v22, %v293_v23 }
 0x26c   :  { %v299_v25 = vmax.f32 %v298_v24, 0.0 }
 0x26e   :  { %489 = vmatmul.mubr.msk.f32.vlgmr.msra.gmra.mrb[2].mxu0 %vm80_vm1, %v299_v25 }
 0x341   :  { %v373_v26 = vpop.f32.mrb[2].mxu0 }
 0x342   :  { %v378_v27 = vsel %vm377_vm3, %v373_v26, 0.0  ;;  %v490_v28 = vpop.f32.mrb[3].mxu0 }
 0x343   :  { %v379_v29 = vrot.slane %v378_v27, 4 }
 0x345   :  { %v380_v30 = vadd.f32 %v379_v29, %v378_v27 }
 0x347   :  { %v381_v31 = vrot.slane %v380_v30, 2 }
 0x349   :  { %v382_v32 = vadd.f32 %v381_v31, %v380_v30 }
 0x34b   :  { %v383_v33 = vrot.slane %v382_v32, 1 }
 0x34d   :  { %v384_v34 = vadd.f32 %v383_v33, %v382_v32 }
 0x34f   :  { %v385_v35 = vmul.f32 0.125, %v384_v34 }
 0x351   :  { %v386_v36 = vsub.f32 %v373_v26, %v385_v35 }
 0x353   :  { %v387_v37 = vmul.f32 %v386_v36, %v386_v36 }
 0x355   :  { %v388_v38 = vsel %vm377_vm3, %v387_v37, 0.0 }
 0x356   :  { %v389_v39 = vrot.slane %v388_v38, 4 }
 0x358   :  { %v390_v40 = vadd.f32 %v389_v39, %v388_v38 }
 0x35a   :  { %v391_v41 = vrot.slane %v390_v40, 2 }
 0x35c   :  { %v392_v42 = vadd.f32 %v391_v41, %v390_v40 }
 0x35e   :  { %v393_v45 = vrot.slane %v392_v42, 1 }
 0x360   :  { %v394_v46 = vadd.f32 %v393_v45, %v392_v42 }
 0x362   :  { %v395_v47 = vmul.f32 0.125, %v394_v46 }
 0x364   :  { %v396_v48 = vadd.f32 1e-05, %v395_v47 }
 0x366   :  { %529 = vrsqrt.f32 %v396_v48 }
 0x370   :  { %v530_v51 = vpop.eup %529 }
 0x371   :  { %v398_v52 = vmul.f32 %v530_v51, %v764_v44 }
 0x373   :  { %v402_v53 = vrot.slane %v398_v52, %v401_v49 }
 0x375   :  { %v403_v55 = vmul.f32 %v402_v53, %v386_v36 }
 0x377   :  { %v408_v56 = vadd.f32 %v407_v54, %v403_v55 }
 0x379   :  { %v409_v57 = vmax.f32 %v408_v56, 0.0 }
 0x37b   :  { %410 = vst.msk [vmem:[#allocation10] sm:$0xff] %vm377_vm3, %v409_v57 }
 0x37c   :  { %630 = shalt.err (!%p627_p8)
}
 0x37d   :  { %s631_s19 = scalar_lea.hbm %s803_s5, 128 }
 0x37e   :  { %p632_p9 = scmp.ne.s32.totalorder %s803_s5, %s631_s19  ;;  %p635_p10 = scmp.lt.u32.totalorder %s631_s19, %s803_s5 }
 0x380   :  { %p637_p11 = pnand %p635_p10, %p632_p9 }
 0x382   :  { %640 = shalt.err (!%p637_p11)
}
 0x383   :  { %420 = dma.vmem_to_hbm [thread:$0]  %s418_s29, 128, %s803_s5, [#allocation4]  }
 0x384   :  { %647 = dma.done.wait [#allocation4], 128  }
 0x385   :  { %648 = vsyncadd [#allocation4], 4294967168 }
 0x386   :  { %424 = vsyncpa [#allocation3], 1 }
 0x387   :  { %425 = vsyncpa [#allocation6], 1 }
 0x388   :  { %426 = vsyncpa [#allocation9], 1 }
 0x389   :  { %427 = vsyncpa [#allocation4], 1 }

</bundles_post_ra>
